<compile_context>
chip_gen: v5e
topology: v5e:2x2
jax: 0.10.0
libtpu: 0.0.40
codegen_flags: <defaults>
</compile_context>

<pallas_src>
import numpy as np
import jax
import jax.numpy as jnp
from jax.experimental import pallas as pl
from jax.experimental.pallas import tpu as pltpu

LANE = 128
TM_MAX = 1024  # (1024,128) f32 block = 512 KiB; 4 streams x 2 buffers ~= 4 MiB VMEM


def _round_up(a, b):
    return -(-a // b) * b


# ------------------------------------------------------------------
# Kernel 1: fused elementwise + global reductions needed by DiceLoss
# and by the positive/negative bookkeeping of BalanceLoss.
#   partials[c, 0] = per-core vector partial of sum(preds * gt * mask)   (intersection)
#   partials[c, 1] = per-core vector partial of sum(preds * mask)
#   partials[c, 2] = per-core vector partial of sum(gt * mask)           (= positive.sum())
#   partials[c, 3] = per-core vector partial of sum((1 - gt) * mask)     (= negative.sum())
#   neg_map        = (1 - gt) * mask                                     (full map, for top-k)
# ------------------------------------------------------------------
def _dice_reduce_kernel(p_ref, g_ref, m_ref, part_ref, neg_ref):
    @pl.when(pl.program_id(1) == 0)
    def _():
        part_ref[...] = jnp.zeros_like(part_ref)

    p = p_ref[...].astype(jnp.float32)
    g = g_ref[...].astype(jnp.float32)
    m = m_ref[...].astype(jnp.float32)
    pm = p * m
    gm = g * m
    neg = m - gm                     # == (1 - g) * m
    neg_ref[...] = neg

    tm = p.shape[0]

    def fold(x):                     # (tm,128) -> (8,128): pure vreg adds on the VPU,
        return x.reshape(tm // 8, 8, LANE).sum(axis=0)   # no cross-lane (XLU) reduce per step

    part_ref[0, 0] += fold(pm * g)
    part_ref[0, 1] += fold(pm)
    part_ref[0, 2] += fold(gm)
    part_ref[0, 3] += fold(neg)


# ------------------------------------------------------------------
# Kernel 2: sum of the largest `negative_count` entries of the (ascending-sorted,
# zero-padded) raw negative map. Dead tiles (wholly below the cutoff) alias the first
# live block in the index_map, so their DMA is skipped and their compute is gated off.
# ------------------------------------------------------------------
def _topk_sum_kernel(ncnt_ref, sneg_ref, part_ref):
    s = pl.program_id(0)
    nsteps = pl.num_programs(0)
    tm, tl = sneg_ref.shape
    blk = tm * tl
    npad = nsteps * blk
    ncount = ncnt_ref[0]
    t0 = npad - ncount                               # keep global idx >= t0 (top-ncount values)
    first_live = jnp.clip(t0 // blk, 0, nsteps - 1)

    @pl.when(s == 0)
    def _():
        part_ref[...] = jnp.zeros_like(part_ref)

    @pl.when(s >= first_live)
    def _():
        row = jax.lax.broadcasted_iota(jnp.int32, (tm, tl), 0)
        col = jax.lax.broadcasted_iota(jnp.int32, (tm, tl), 1)
        gidx = s * blk + row * tl + col
        x = jnp.where(gidx >= t0, sneg_ref[...], 0.0)
        part_ref[...] += x.reshape(tm // 8, 8, tl).sum(axis=0)


def _to_tiles(x, rows_p):
    flat = x.reshape(-1)                 # keep native dtype; upcast happens in-kernel
    padded_total = rows_p * LANE
    if padded_total != flat.shape[0]:
        # TODO(synk): zero-padding costs one extra copy per input when shapes aren't
        # tile-aligned; a manual-DMA ragged-tail mask would remove it. Zero padding is
        # semantics-preserving for every quantity computed here.
        flat = jnp.pad(flat, (0, padded_total - flat.shape[0]))
    return flat.reshape(rows_p, LANE)


def balance_loss_dice(preds, gt, mask, negative_ratio=3, eps=1e-6):
    """BalanceLoss(loss_type='DiceLoss') forward pass."""
    total = int(np.prod(preds.shape))
    rows = -(-total // LANE)

    itemsize = min(jnp.dtype(a.dtype).itemsize for a in (preds, gt, mask))
    sub = max(8, 32 // max(itemsize, 1))          # sublane multiple for the narrowest dtype

    tile = TM_MAX if rows >= TM_MAX else _round_up(rows, sub)
    ncores = 2 if rows > tile else 1              # 2-way core split when there are >=2 tiles
    steps = -(-rows // (tile * ncores))           # per-core grid steps
    rows_p = steps * tile * ncores

    p2 = _to_tiles(preds, rows_p)
    g2 = _to_tiles(gt, rows_p)
    m2 = _to_tiles(mask, rows_p)

    tile_spec = pl.BlockSpec((tile, LANE), lambda c, s: (c * steps + s, 0))
    part_spec = pl.BlockSpec((1, 4, 8, LANE), lambda c, s: (c, 0, 0, 0))

    partials, neg_map = pl.pallas_call(
        _dice_reduce_kernel,
        grid=(ncores, steps),
        in_specs=[tile_spec, tile_spec, tile_spec],
        out_specs=[part_spec, tile_spec],
        out_shape=[
            jax.ShapeDtypeStruct((ncores, 4, 8, LANE), jnp.float32),
            jax.ShapeDtypeStruct((rows_p, LANE), jnp.float32),
        ],
        compiler_params=pltpu.CompilerParams(
            dimension_semantics=("parallel", "arbitrary")),
    )(p2, g2, m2)

    sums = jnp.sum(partials, axis=(0, 2, 3))      # tiny final reduce of the vector partials
    intersection, s_pm, s_gm, s_neg = sums[0], sums[1], sums[2], sums[3]

    # DiceLoss scalar; provably in [0, 1] for non-negative preds/gt/mask.
    union = s_pm + s_gm + eps
    loss = 1.0 - 2.0 * intersection / union

    # int(...) truncation semantics of the PyTorch code.
    positive_count = jnp.trunc(s_gm)
    negative_count = jnp.trunc(jnp.minimum(s_neg, positive_count * negative_ratio))

    # positive_loss.sum() == loss * sum(gt*mask) since loss is a scalar -> no second read of gt/mask.
    pos_loss_sum = loss * s_gm

    # Sort the RAW negative map (loss >= 0 keeps the ordering) and scale the top-k sum by `loss`
    # afterwards; ascending sort + "take the trailing k" also avoids a full reverse pass.
    # TODO(synk): the O(N log N) full sort could be replaced by a 2-pass histogram/threshold
    # top-k-sum scheme for production-sized maps; kept as jnp.sort for exactness.
    sorted_neg = jnp.sort(neg_map.reshape(-1))
    sneg2 = sorted_neg.reshape(rows_p, LANE)

    steps2 = rows_p // tile
    blk_elems = tile * LANE
    npad_elems = steps2 * blk_elems

    def sneg_index_map(s, ncnt_ref):
        first_live = jnp.clip((npad_elems - ncnt_ref[0]) // blk_elems, 0, steps2 - 1)
        return (jnp.maximum(s, first_live), 0)    # dead tiles alias the first live block (DMA skipped)

    ncnt = negative_count.astype(jnp.int32).reshape(1)

    part2 = pl.pallas_call(
        _topk_sum_kernel,
        grid_spec=pltpu.PrefetchScalarGridSpec(
            num_scalar_prefetch=1,
            grid=(steps2,),
            in_specs=[pl.BlockSpec((tile, LANE), sneg_index_map)],
            out_specs=pl.BlockSpec((8, LANE), lambda s, ncnt_ref: (0, 0)),
        ),
        out_shape=jax.ShapeDtypeStruct((8, LANE), jnp.float32),
        compiler_params=pltpu.CompilerParams(dimension_semantics=("arbitrary",)),
    )(ncnt, sneg2)

    topk_neg_sum = loss * jnp.sum(part2)

    balance = jnp.where(
        negative_count > 0,
        (pos_loss_sum + topk_neg_sum) / (positive_count + negative_count + eps),
        pos_loss_sum / (positive_count + eps),
    )
    return balance


# Pure-JAX reference replicating the PyTorch semantics (for sanity check).
def _reference(preds, gt, mask, negative_ratio=3, eps=1e-6):
    preds = preds.astype(jnp.float32)
    gt = gt.astype(jnp.float32)
    mask = mask.astype(jnp.float32)
    intersection = jnp.sum(preds * gt * mask)
    union = jnp.sum(preds * mask) + jnp.sum(gt * mask) + eps
    loss = 1.0 - 2.0 * intersection / union
    positive = gt * mask
    negative = (1.0 - gt) * mask
    positive_count = int(np.trunc(float(positive.sum())))
    negative_count = int(min(float(negative.sum()), positive_count * negative_ratio))
    positive_loss = positive * loss
    negative_loss = (negative * loss).reshape(-1)
    if negative_count > 0:
        sort_loss = jnp.sort(negative_loss)[::-1]
        negative_loss = sort_loss[:negative_count]
        balance = (positive_loss.sum() + negative_loss.sum()) / (
            positive_count + negative_count + eps
        )
    else:
        balance = positive_loss.sum() / (positive_count + eps)
    return balance


if __name__ == "__main__":
    key = jax.random.PRNGKey(0)
    k1, k2, k3 = jax.random.split(key, 3)

    N, C, H, W = 2, 4, 16, 16
    preds = jax.random.uniform(k1, (N, C, H, W), dtype=jnp.float32)          # prob map
    gt = (jax.random.uniform(k2, (N, C, H, W)) > 0.7).astype(jnp.float32)    # binary gt
    mask = (jax.random.uniform(k3, (N, C, H, W)) > 0.2).astype(jnp.float32)  # binary mask

    out = jax.block_until_ready(balance_loss_dice(preds, gt, mask))
    ref = jax.block_until_ready(_reference(preds, gt, mask))
    assert np.allclose(np.asarray(out), np.asarray(ref), rtol=1e-3, atol=1e-5), (
        float(out),
        float(ref),
    )

    print("KERNEL_OK")
</pallas_src>

<mosaic_0001>
module attributes {stable_mosaic.version = 11 : i64} {
  func.func @_dice_reduce_kernel(%arg0: i32, %arg1: i32, %arg2: memref<16x128xf32, #tpu.memory_space<vmem>>, %arg3: memref<16x128xf32, #tpu.memory_space<vmem>>, %arg4: memref<16x128xf32, #tpu.memory_space<vmem>>, %arg5: memref<1x4x8x128xf32, #tpu.memory_space<vmem>>, %arg6: memref<16x128xf32, #tpu.memory_space<vmem>>) attributes {dimension_semantics = [#tpu.dimension_semantics<parallel>, #tpu.dimension_semantics<arbitrary>], iteration_bounds = array<i64: 1, 1>, scalar_prefetch = 0 : i64, scratch_operands = 0 : i64, tpu.core_type = #tpu.core_type<tc>, window_params = [{transform_indices = @transform_0, window_bounds = array<i64: 16, 128>}, {transform_indices = @transform_1, window_bounds = array<i64: 16, 128>}, {transform_indices = @transform_2, window_bounds = array<i64: 16, 128>}, {transform_indices = @transform_3, window_bounds = array<i64: 1, 4, 8, 128>}, {transform_indices = @transform_4, window_bounds = array<i64: 16, 128>}]} {
    %c0_i32 = arith.constant 0 : i32
    %0 = arith.cmpi eq, %arg1, %c0_i32 : i32
    %1 = arith.extui %0 : i1 to i32
    %c0_i32_0 = arith.constant 0 : i32
    %2 = arith.cmpi ne, %1, %c0_i32_0 : i32
    scf.if %2 {
      %cst_40 = arith.constant 0.000000e+00 : f32
      %43 = vector.broadcast %cst_40 : f32 to vector<1x4x8x128xf32>
      %c0_41 = arith.constant 0 : index
      %c0_42 = arith.constant 0 : index
      %c0_43 = arith.constant 0 : index
      %c0_44 = arith.constant 0 : index
      %44 = vector.load %arg5[%c0_41, %c0_42, %c0_43, %c0_44] : memref<1x4x8x128xf32, #tpu.memory_space<vmem>>, vector<1x4x8x128xf32>
      tpu.vector_store %arg5[%c0_41, %c0_42, %c0_43, %c0_44], %43 {strides = array<i32>} : memref<1x4x8x128xf32, #tpu.memory_space<vmem>>, vector<1x4x8x128xf32>,
    } else {
    }
    %c0 = arith.constant 0 : index
    %c0_1 = arith.constant 0 : index
    %3 = vector.load %arg2[%c0, %c0_1] : memref<16x128xf32, #tpu.memory_space<vmem>>, vector<16x128xf32>
    %c0_2 = arith.constant 0 : index
    %c0_3 = arith.constant 0 : index
    %4 = vector.load %arg3[%c0_2, %c0_3] : memref<16x128xf32, #tpu.memory_space<vmem>>, vector<16x128xf32>
    %c0_4 = arith.constant 0 : index
    %c0_5 = arith.constant 0 : index
    %5 = vector.load %arg4[%c0_4, %c0_5] : memref<16x128xf32, #tpu.memory_space<vmem>>, vector<16x128xf32>
    %6 = arith.mulf %3, %5 : vector<16x128xf32>
    %7 = arith.mulf %4, %5 : vector<16x128xf32>
    %8 = arith.subf %5, %7 : vector<16x128xf32>
    %c0_6 = arith.constant 0 : index
    %c0_7 = arith.constant 0 : index
    %9 = vector.load %arg6[%c0_6, %c0_7] : memref<16x128xf32, #tpu.memory_space<vmem>>, vector<16x128xf32>
    tpu.vector_store %arg6[%c0_6, %c0_7], %8 {strides = array<i32>} : memref<16x128xf32, #tpu.memory_space<vmem>>, vector<16x128xf32>,
    %c0_8 = arith.constant 0 : index
    %c0_9 = arith.constant 0 : index
    %c0_10 = arith.constant 0 : index
    %c0_11 = arith.constant 0 : index
    %10 = vector.load %arg5[%c0_8, %c0_9, %c0_10, %c0_11] : memref<1x4x8x128xf32, #tpu.memory_space<vmem>>, vector<1x1x8x128xf32>
    %11 = vector.shape_cast %10 : vector<1x1x8x128xf32> to vector<8x128xf32>
    %12 = arith.mulf %6, %4 : vector<16x128xf32>
    %13 = vector.shape_cast %12 : vector<16x128xf32> to vector<2x8x128xf32>
    %cst = arith.constant dense<0.000000e+00> : vector<8x128xf32>
    %14 = vector.multi_reduction <add>, %13, %cst [0] : vector<2x8x128xf32> to vector<8x128xf32>
    %15 = arith.addf %11, %14 : vector<8x128xf32>
    %c0_12 = arith.constant 0 : index
    %c0_13 = arith.constant 0 : index
    %c0_14 = arith.constant 0 : index
    %c0_15 = arith.constant 0 : index
    %16 = vector.load %arg5[%c0_12, %c0_13, %c0_14, %c0_15] : memref<1x4x8x128xf32, #tpu.memory_space<vmem>>, vector<1x1x8x128xf32>
    %17 = vector.shape_cast %16 : vector<1x1x8x128xf32> to vector<8x128xf32>
    %18 = vector.shape_cast %15 : vector<8x128xf32> to vector<1x1x8x128xf32>
    tpu.vector_store %arg5[%c0_12, %c0_13, %c0_14, %c0_15], %18 {strides = array<i32>} : memref<1x4x8x128xf32, #tpu.memory_space<vmem>>, vector<1x1x8x128xf32>,
    %c0_16 = arith.constant 0 : index
    %c1 = arith.constant 1 : index
    %c0_17 = arith.constant 0 : index
    %c0_18 = arith.constant 0 : index
    %19 = vector.load %arg5[%c0_16, %c1, %c0_17, %c0_18] : memref<1x4x8x128xf32, #tpu.memory_space<vmem>>, vector<1x1x8x128xf32>
    %20 = vector.shape_cast %19 : vector<1x1x8x128xf32> to vector<8x128xf32>
    %21 = vector.shape_cast %6 : vector<16x128xf32> to vector<2x8x128xf32>
    %cst_19 = arith.constant dense<0.000000e+00> : vector<8x128xf32>
    %22 = vector.multi_reduction <add>, %21, %cst_19 [0] : vector<2x8x128xf32> to vector<8x128xf32>
    %23 = arith.addf %20, %22 : vector<8x128xf32>
    %c0_20 = arith.constant 0 : index
    %c1_21 = arith.constant 1 : index
    %c0_22 = arith.constant 0 : index
    %c0_23 = arith.constant 0 : index
    %24 = vector.load %arg5[%c0_20, %c1_21, %c0_22, %c0_23] : memref<1x4x8x128xf32, #tpu.memory_space<vmem>>, vector<1x1x8x128xf32>
    %25 = vector.shape_cast %24 : vector<1x1x8x128xf32> to vector<8x128xf32>
    %26 = vector.shape_cast %23 : vector<8x128xf32> to vector<1x1x8x128xf32>
    tpu.vector_store %arg5[%c0_20, %c1_21, %c0_22, %c0_23], %26 {strides = array<i32>} : memref<1x4x8x128xf32, #tpu.memory_space<vmem>>, vector<1x1x8x128xf32>,
    %c0_24 = arith.constant 0 : index
    %c2 = arith.constant 2 : index
    %c0_25 = arith.constant 0 : index
    %c0_26 = arith.constant 0 : index
    %27 = vector.load %arg5[%c0_24, %c2, %c0_25, %c0_26] : memref<1x4x8x128xf32, #tpu.memory_space<vmem>>, vector<1x1x8x128xf32>
    %28 = vector.shape_cast %27 : vector<1x1x8x128xf32> to vector<8x128xf32>
    %29 = vector.shape_cast %7 : vector<16x128xf32> to vector<2x8x128xf32>
    %cst_27 = arith.constant dense<0.000000e+00> : vector<8x128xf32>
    %30 = vector.multi_reduction <add>, %29, %cst_27 [0] : vector<2x8x128xf32> to vector<8x128xf32>
    %31 = arith.addf %28, %30 : vector<8x128xf32>
    %c0_28 = arith.constant 0 : index
    %c2_29 = arith.constant 2 : index
    %c0_30 = arith.constant 0 : index
    %c0_31 = arith.constant 0 : index
    %32 = vector.load %arg5[%c0_28, %c2_29, %c0_30, %c0_31] : memref<1x4x8x128xf32, #tpu.memory_space<vmem>>, vector<1x1x8x128xf32>
    %33 = vector.shape_cast %32 : vector<1x1x8x128xf32> to vector<8x128xf32>
    %34 = vector.shape_cast %31 : vector<8x128xf32> to vector<1x1x8x128xf32>
    tpu.vector_store %arg5[%c0_28, %c2_29, %c0_30, %c0_31], %34 {strides = array<i32>} : memref<1x4x8x128xf32, #tpu.memory_space<vmem>>, vector<1x1x8x128xf32>,
    %c0_32 = arith.constant 0 : index
    %c3 = arith.constant 3 : index
    %c0_33 = arith.constant 0 : index
    %c0_34 = arith.constant 0 : index
    %35 = vector.load %arg5[%c0_32, %c3, %c0_33, %c0_34] : memref<1x4x8x128xf32, #tpu.memory_space<vmem>>, vector<1x1x8x128xf32>
    %36 = vector.shape_cast %35 : vector<1x1x8x128xf32> to vector<8x128xf32>
    %37 = vector.shape_cast %8 : vector<16x128xf32> to vector<2x8x128xf32>
    %cst_35 = arith.constant dense<0.000000e+00> : vector<8x128xf32>
    %38 = vector.multi_reduction <add>, %37, %cst_35 [0] : vector<2x8x128xf32> to vector<8x128xf32>
    %39 = arith.addf %36, %38 : vector<8x128xf32>
    %c0_36 = arith.constant 0 : index
    %c3_37 = arith.constant 3 : index
    %c0_38 = arith.constant 0 : index
    %c0_39 = arith.constant 0 : index
    %40 = vector.load %arg5[%c0_36, %c3_37, %c0_38, %c0_39] : memref<1x4x8x128xf32, #tpu.memory_space<vmem>>, vector<1x1x8x128xf32>
    %41 = vector.shape_cast %40 : vector<1x1x8x128xf32> to vector<8x128xf32>
    %42 = vector.shape_cast %39 : vector<8x128xf32> to vector<1x1x8x128xf32>
    tpu.vector_store %arg5[%c0_36, %c3_37, %c0_38, %c0_39], %42 {strides = array<i32>} : memref<1x4x8x128xf32, #tpu.memory_space<vmem>>, vector<1x1x8x128xf32>,
    return
  }
  func.func @transform_0(%arg0: i32, %arg1: i32) -> (i32, i32) {
    %c1_i32 = arith.constant 1 : i32
    %0 = arith.muli %arg0, %c1_i32 : i32
    %1 = arith.addi %0, %arg1 : i32
    %c0_i32 = arith.constant 0 : i32
    %c0_i32_0 = arith.constant 0 : i32
    return %1, %c0_i32 : i32, i32
  }
  func.func @transform_1(%arg0: i32, %arg1: i32) -> (i32, i32) {
    %c1_i32 = arith.constant 1 : i32
    %0 = arith.muli %arg0, %c1_i32 : i32
    %1 = arith.addi %0, %arg1 : i32
    %c0_i32 = arith.constant 0 : i32
    %c0_i32_0 = arith.constant 0 : i32
    return %1, %c0_i32 : i32, i32
  }
  func.func @transform_2(%arg0: i32, %arg1: i32) -> (i32, i32) {
    %c1_i32 = arith.constant 1 : i32
    %0 = arith.muli %arg0, %c1_i32 : i32
    %1 = arith.addi %0, %arg1 : i32
    %c0_i32 = arith.constant 0 : i32
    %c0_i32_0 = arith.constant 0 : i32
    return %1, %c0_i32 : i32, i32
  }
  func.func @transform_3(%arg0: i32, %arg1: i32) -> (i32, i32, i32, i32) {
    %c0_i32 = arith.constant 0 : i32
    %c0_i32_0 = arith.constant 0 : i32
    %c0_i32_1 = arith.constant 0 : i32
    %c0_i32_2 = arith.constant 0 : i32
    return %arg0, %c0_i32, %c0_i32_0, %c0_i32_1 : i32, i32, i32, i32
  }
  func.func @transform_4(%arg0: i32, %arg1: i32) -> (i32, i32) {
    %c1_i32 = arith.constant 1 : i32
    %0 = arith.muli %arg0, %c1_i32 : i32
    %1 = arith.addi %0, %arg1 : i32
    %c0_i32 = arith.constant 0 : i32
    %c0_i32_0 = arith.constant 0 : i32
    return %1, %c0_i32 : i32, i32
  }
}

</mosaic_0001>

<bundles_post_ra>
// kernel: tpu_custom_call.1
= control target key start
LH: loop header
LB: loop body
LE: loop exit
PB: predicated region body
PF: predicated region fallthrough
CT: control target
= control target key end

     0   :  { %10 = vsyncpa [#allocation3], 0  ;;  %s368_s0 = inlined_call_operand.hbm [shape: f32[16,128], index: 0, kind: input, shape index: {}]   ;;  %s369_s1 = inlined_call_operand.hbm [shape: f32[16,128], index: 1, kind: input, shape index: {}]   ;;  %s370_s2 = inlined_call_operand.hbm [shape: f32[16,128], index: 2, kind: input, shape index: {}]   ;;  %s371_s3 = inlined_call_operand.hbm [shape: f32[1,4,8,128], index: 3, kind: output, shape index: {0}]   ;;  %s372_s4 = inlined_call_operand.hbm [shape: f32[16,128], index: 4, kind: output, shape index: {1}]  }
   0x1   :  { %11 = vsyncpa [#allocation6], 0 }
   0x2   :  { %12 = vsyncpa [#allocation4], 0 }
   0x3   :  { %13 = vsyncpa [#allocation10], 0  ;;  %s39_s17 = sshll.u32 %s369_s1, 4  ;;  %s306_s18 = smov [#allocation5]   ;;  %s40_s17 = int_to_ptr.hbm [resolvable:$true] %s39_s17 }
   0x4   :  { %s41_s19 = sshll.u32 %s306_s18, 4  ;;  %s22_s22 = sshll.u32 %s368_s0, 4  ;;  %s42_s19 = int_to_ptr.vmem [resolvable:$true] %s41_s19  ;;  %s23_s22 = int_to_ptr.hbm [resolvable:$true] %s22_s22 }
   0x5   :  { %s307_s23 = smov 128   ;;  %s308_s24 = smov 8  }
   0x6   :  { %47 = dma.hbm_to_vmem [thread:$0]  %s40_s17, 256, %s42_s19, [#allocation6], %s307_s23, %s307_s23, %s308_s24  }
   0x7   :  { %s309_s25 = smov [#allocation2]   ;;  %s56_s1 = sshll.u32 %s370_s2, 4  ;;  %s57_s1 = int_to_ptr.hbm [resolvable:$true] %s56_s1 }
   0x8   :  { %s24_s26 = sshll.u32 %s309_s25, 4  ;;  %s310_s0 = smov [#allocation7]   ;;  %s25_s26 = int_to_ptr.vmem [resolvable:$true] %s24_s26 }
   0x9   :  { %30 = dma.hbm_to_vmem [thread:$0]  %s23_s22, 256, %s25_s26, [#allocation3], %s307_s23, %s307_s23, %s308_s24  }
   0xa   :  { %s58_s29 = sshll.u32 %s310_s0, 4  ;;  %s59_s29 = int_to_ptr.vmem [resolvable:$true] %s58_s29 }
   0xb   :  { %64 = dma.hbm_to_vmem [thread:$0]  %s57_s1, 256, %s59_s29, [#allocation6], %s307_s23, %s307_s23, %s308_s24  }
   0xc   :  { %298 = dma.done.wait [#allocation3], 256  }
   0xd   :  { %299 = vsyncadd [#allocation3], 4294967040 }
   0xe   :  { %300 = dma.done.wait [#allocation6], 512  }
   0xf   :  { %301 = vsyncadd [#allocation6], 4294966784  ;;  %v93_v0 = vld [vmem:[#allocation2] sm:$0xff]  ;;  %v95_v1 = vld [vmem:[#allocation5] sm:$0xff]  ;;  %s311_s2 = smov [#allocation9]   ;;  %s151_s7 = sshll.u32 %s372_s4, 4  ;;  %s152_s7 = int_to_ptr.hbm [resolvable:$true] %s151_s7 }
  0x10   :  { %v97_v2 = vld [vmem:[#allocation7] sm:$0xff]  ;;  %v94_v5 = vld [vmem:[#allocation2 + $0x8] sm:$0xff]  ;;  %v96_v6 = vld [vmem:[#allocation5 + $0x8] sm:$0xff]  ;;  %s149_s30 = sshll.u32 %s311_s2, 4  ;;  %s312_s8 = smov [#allocation8]   ;;  %s150_s30 = int_to_ptr.vmem [resolvable:$true] %s149_s30 }
  0x11   :  { %v99_v3 = vmul.f32 %v97_v2, %v93_v0  ;;  %v101_v4 = vmul.f32 %v97_v2, %v95_v1  ;;  %v98_v7 = vld [vmem:[#allocation7 + $0x8] sm:$0xff]  ;;  %s132_s9 = sshll.u32 %s312_s8, 4  ;;  %s134_s4 = sshll.u32 %s371_s3, 4  ;;  %s133_s9 = int_to_ptr.vmem [resolvable:$true] %s132_s9  ;;  %s135_s4 = int_to_ptr.hbm [resolvable:$true] %s134_s4 }
  0x12   :  { %v100_v8 = vmul.f32 %v98_v7, %v94_v5  ;;  %v102_v9 = vmul.f32 %v98_v7, %v96_v6 }
  0x13   :  { %v103_v10 = vsub.f32 %v97_v2, %v101_v4  ;;  %v108_v11 = vmul.f32 %v99_v3, %v95_v1 }
  0x14   :  { %v104_v12 = vsub.f32 %v98_v7, %v102_v9  ;;  %v109_v13 = vmul.f32 %v100_v8, %v96_v6  ;;  %v120_v14 = vadd.f32 %v102_v9, %v101_v4  ;;  %v115_v15 = vadd.f32 %v100_v8, %v99_v3 }
  0x15   :  { %105 = vst [vmem:[#allocation9] sm:$0xff] %v103_v10 }
  0x16   :  { %106 = vst [vmem:[#allocation9 + $0x8] sm:$0xff] %v104_v12  ;;  %v125_v16 = vadd.f32 %v104_v12, %v103_v10  ;;  %v110_v17 = vadd.f32 %v109_v13, %v108_v11 }
  0x17   :  { %157 = dma.vmem_to_hbm [thread:$0]  %s150_s30, 256, %s152_s7, [#allocation10], %s307_s23, %s307_s23, %s308_s24   ;;  %117 = vst [vmem:[#allocation8 + $0x8] sm:$0xff] %v115_v15 }
  0x18   :  { %122 = vst [vmem:[#allocation8 + $0x10] sm:$0xff] %v120_v14 }
  0x19   :  { %112 = vst [vmem:[#allocation8] sm:$0xff] %v110_v17 }
  0x1a   :  { %127 = vst [vmem:[#allocation8 + $0x18] sm:$0xff] %v125_v16 }
  0x1b   :  { %140 = dma.vmem_to_hbm [thread:$0]  %s133_s9, 512, %s135_s4, [#allocation4], %s307_s23, %s307_s23, %s308_s24  }
  0x1c   :  { %302 = dma.done.wait [#allocation4], 512  }
  0x1d   :  { %303 = vsyncadd [#allocation4], 4294966784 }
  0x1e   :  { %304 = dma.done.wait [#allocation10], 256  }
  0x1f   :  { %305 = vsyncadd [#allocation10], 4294967040 }
  0x20   :  { %166 = vsyncpa [#allocation3], 1 }
  0x21   :  { %167 = vsyncpa [#allocation6], 1 }
  0x22   :  { %168 = vsyncpa [#allocation4], 1 }
  0x23   :  { %169 = vsyncpa [#allocation10], 1 }

</bundles_post_ra>
